<compile_context>
chip_gen: v7x
topology: tpu7x:2x2x1
jax: 0.10.0
libtpu: 0.0.40
codegen_flags: <defaults>
</compile_context>

<pallas_src>
import functools

import jax
import jax.numpy as jnp
from jax.experimental import pallas as pl
from jax.experimental.pallas import tpu as pltpu


def linear_kernel(x_ref, wt_ref, o_ref):
    # x_ref: (TB, F_in) in VMEM; wt_ref: (F_in, F_out) in VMEM (pre-transposed).
    # Plain contraction on (lhs last dim, rhs first dim) -> MXU-native feed,
    # f32 accumulation.
    o_ref[...] = jnp.dot(
        x_ref[...], wt_ref[...], preferred_element_type=jnp.float32
    ).astype(o_ref.dtype)


def prepare_params(weight):
    """One-time parameter prep: PyTorch (F_out, F_in) -> (F_in, F_out).

    Done once at load time, outside the per-call hot path, so the kernel
    never pays for an RHS transpose.
    """
    return jnp.asarray(weight).T


# Batch tile for the scaled-up path: multiple of 8 sublanes, >=512 rows so the
# ~0.35 us per-grid-step overhead is amortized (measured ~85% of HBM roofline
# at 512-1024 row tiles vs ~29% at 128).
_TB = 512


@functools.partial(jax.jit, static_argnames=())
def net_forward(x, w_t):
    """Forward pass of Net: y = x @ W.T  (== x @ w_t), no bias.

    x:   (B, F_in)  float32
    w_t: (F_in, F_out) float32, already transposed from PyTorch layout.
    """
    B, F_in = x.shape
    F_out = w_t.shape[1]
    out_shape = jax.ShapeDtypeStruct((B, F_out), x.dtype)

    # Small batches: gridless single-shot kernel, whole arrays in VMEM.
    if B < _TB or B % 8 != 0:
        return pl.pallas_call(
            linear_kernel,
            out_shape=out_shape,
            in_specs=[
                pl.BlockSpec(memory_space=pltpu.VMEM),
                pl.BlockSpec(memory_space=pltpu.VMEM),
            ],
            out_specs=pl.BlockSpec(memory_space=pltpu.VMEM),
        )(x, w_t)

    # Large batches: tile only over B; weight block resident (constant
    # index_map -> DMA'd once); batch axis is embarrassingly parallel so the
    # two TensorCores on v7x split it.
    tb = _TB if B % _TB == 0 else 8  # keep blocks evenly dividing B
    grid = (B // tb,)
    return pl.pallas_call(
        linear_kernel,
        out_shape=out_shape,
        grid_spec=pltpu.PrefetchScalarGridSpec(
            num_scalar_prefetch=0,
            grid=grid,
            in_specs=[
                pl.BlockSpec((tb, F_in), lambda i: (i, 0)),
                pl.BlockSpec((F_in, F_out), lambda i: (0, 0)),  # resident weight
            ],
            out_specs=pl.BlockSpec((tb, F_out), lambda i: (i, 0)),
        ),
        compiler_params=pltpu.CompilerParams(
            dimension_semantics=("parallel",),
        ),
    )(x, w_t)


if __name__ == "__main__":
    key = jax.random.PRNGKey(0)
    kx, kw, kb = jax.random.split(key, 3)

    B, F_in, F_out = 8, 10, 10
    x = jax.random.normal(kx, (B, F_in), dtype=jnp.float32)
    # Deterministic weight init (uniform, mimicking PyTorch's default bound),
    # in PyTorch convention (out_features, in_features).
    bound = 1.0 / jnp.sqrt(F_in)
    weight = jax.random.uniform(
        kw, (F_out, F_in), dtype=jnp.float32, minval=-bound, maxval=bound
    )

    # One-time parameter prep (outside the hot path).
    w_t = prepare_params(weight)

    # Small-batch (gridless) path.
    y = jax.block_until_ready(net_forward(x, w_t))
    y_ref = x @ weight.T
    assert y.shape == (B, F_out)
    assert jnp.allclose(y, y_ref, atol=1e-5, rtol=1e-5)

    # Exercise the batch-tiled (resident-weight, parallel-over-B) path too.
    B_big = 1024
    x_big = jax.random.normal(kb, (B_big, F_in), dtype=jnp.float32)
    y_big = jax.block_until_ready(net_forward(x_big, w_t))
    y_big_ref = x_big @ weight.T
    assert y_big.shape == (B_big, F_out)
    assert jnp.allclose(y_big, y_big_ref, atol=1e-5, rtol=1e-5)

    print("KERNEL_OK")
</pallas_src>

<mosaic_0001>
module attributes {stable_mosaic.version = 11 : i64} {
  func.func @linear_kernel(%arg0: memref<8x10xf32, #tpu.memory_space<vmem>>, %arg1: memref<10x10xf32, #tpu.memory_space<vmem>>, %arg2: memref<8x10xf32, #tpu.memory_space<vmem>>) attributes {dimension_semantics = [], scalar_prefetch = 0 : i64, scratch_operands = 0 : i64, tpu.core_type = #tpu.core_type<tc>} {
    %c0 = arith.constant 0 : index
    %c0_0 = arith.constant 0 : index
    %0 = vector.load %arg0[%c0, %c0_0] : memref<8x10xf32, #tpu.memory_space<vmem>>, vector<8x10xf32>
    %c0_1 = arith.constant 0 : index
    %c0_2 = arith.constant 0 : index
    %1 = vector.load %arg1[%c0_1, %c0_2] : memref<10x10xf32, #tpu.memory_space<vmem>>, vector<10x10xf32>
    %cst = arith.constant dense<0.000000e+00> : vector<8x10xf32>
    %2 = tpu.matmul %0, %1, %cst {dimension_numbers = #tpu.dot_dimension_numbers<[1], [0], [0], [1], [0, 0, 1, 1], [], []>} : vector<8x10xf32>, vector<10x10xf32>, vector<8x10xf32> -> vector<8x10xf32>
    %c0_3 = arith.constant 0 : index
    %c0_4 = arith.constant 0 : index
    %3 = vector.load %arg2[%c0_3, %c0_4] : memref<8x10xf32, #tpu.memory_space<vmem>>, vector<8x10xf32>
    tpu.vector_store %arg2[%c0_3, %c0_4], %2 {strides = array<i32>} : memref<8x10xf32, #tpu.memory_space<vmem>>, vector<8x10xf32>,
    return
  }
}

</mosaic_0001>

<bundles_post_ra>
// kernel: net_forward.1
= control target key start
LH: loop header
LB: loop body
LE: loop exit
PB: predicated region body
PF: predicated region fallthrough
CT: control target
= control target key end

     0   :  { %7 = vsyncpa [#allocation3], 0  ;;  %s300_s0 = inlined_call_operand.hbm [shape: f32[8,10], index: 0, kind: input, shape index: {}]   ;;  %s301_s1 = inlined_call_operand.hbm [shape: f32[10,10], index: 1, kind: input, shape index: {}]   ;;  %s302_s2 = inlined_call_operand.hbm [shape: f32[8,10], index: 2, kind: output, shape index: {}]  }
   0x1   :  { %8 = vsyncpa [#allocation6], 0 }
   0x2   :  { %9 = vsyncpa [#allocation4], 0  ;;  %s233_s9 = smov [#allocation2]   ;;  %s234_s11 = smov [#allocation5]  }
   0x3   :  { %s16_s10 = sshll.u32 %s233_s9, 4  ;;  %s25_s12 = sshll.u32 %s234_s11, 4  ;;  %s17_s10 = int_to_ptr.vmem [resolvable:$true] %s16_s10  ;;  %s257_s12 = int_to_ptr.vmem [resolvable:$true] %s25_s12 }
   0x4   :  { %s161_s15 = scalar_lea.hbm %s300_s0, 128 }
   0x5   :  { %p162_p0 = scmp.ne.s32.totalorder %s300_s0, %s161_s15  ;;  %p165_p1 = scmp.lt.u32.totalorder %s161_s15, %s300_s0 }
   0x7   :  { %p167_p2 = pnand %p165_p1, %p162_p0 }
   0x9   :  { %170 = shalt.err (!%p167_p2)
}
   0xa   :  { %s171_s20 = scalar_lea.vmem %s17_s10, 128  ;;  %p176_p4 = scmp.lt.s32.totalorder %s17_s10, %s17_s10 }
   0xb   :  { %p172_p3 = scmp.ne.s32.totalorder %s17_s10, %s171_s20  ;;  %p177_p5 = scmp.lt.s32.totalorder %s171_s20, %s171_s20 }
   0xd   :  { %p178_p6 = por %p177_p5, %p176_p4 }
   0xf   :  { %p179_p7 = pnand %p178_p6, %p172_p3 }
  0x11   :  { %182 = shalt.err (!%p179_p7)
}
  0x12   :  { %19 = dma.hbm_to_vmem [thread:$0]  %s300_s0, 128, %s17_s10, [#allocation3]  }
  0x13   :  { %s183_s25 = scalar_lea.hbm %s301_s1, 256 }
  0x14   :  { %p184_p8 = scmp.ne.s32.totalorder %s301_s1, %s183_s25  ;;  %p187_p9 = scmp.lt.u32.totalorder %s183_s25, %s301_s1 }
  0x16   :  { %p189_p10 = pnand %p187_p9, %p184_p8 }
  0x18   :  { %192 = shalt.err (!%p189_p10)
}
  0x19   :  { %s193_s30 = scalar_lea.vmem %s257_s12, 256  ;;  %p198_p12 = scmp.lt.s32.totalorder %s257_s12, %s257_s12 }
  0x1a   :  { %p194_p11 = scmp.ne.s32.totalorder %s257_s12, %s193_s30  ;;  %p199_p13 = scmp.lt.s32.totalorder %s193_s30, %s193_s30 }
  0x1c   :  { %p200_p0 = por %p199_p13, %p198_p12 }
  0x1e   :  { %p201_p1 = pnand %p200_p0, %p194_p11 }
  0x20   :  { %204 = shalt.err (!%p201_p1)
}
  0x21   :  { %s235_s0 = smov 128   ;;  %s236_s3 = smov 8  }
  0x22   :  { %31 = dma.hbm_to_vmem [thread:$0]  %s301_s1, 256, %s257_s12, [#allocation6], %s235_s0, %s235_s0, %s236_s3  }
  0x23   :  { %227 = dma.done.wait [#allocation3], 128  }
  0x24   :  { %228 = vsyncadd [#allocation3], 4294967168 }
  0x25   :  { %229 = dma.done.wait [#allocation6], 256  }
  0x26   :  { %230 = vsyncadd [#allocation6], 4294967040  ;;  %v237_v0 = vmov 0.0|0.0   ;;  %vm238_vm0 = vmmov 0   ;;  %v239_v1 = vmov 0.0   ;;  %vm45_vm1 = vcmask 1041408  }
  0x27   :  { %148 = vmatprep.subr.bf16.mxu0 %v237_v0  ;;  %145 = vmatprep.mubr.msk.f32.mxu0 %vm238_vm0, %v239_v1  ;;  %v39_v2 = vld [vmem:[#allocation5] sm:$0xff]  ;;  %v40_v3 = vld [vmem:[#allocation5 + $0x8] sm:$0x3]  ;;  %vm240_vm2 = vmmov 1   ;;  %v38_v5 = vld [vmem:[#allocation2] sm:$0xff]  ;;  %vm41_vm4 = vcmask 80896  }
  0x28   :  { %vm150_vm3 = vmpackc.low %vm45_vm1, %vm240_vm2  ;;  %v149_v4 = vpack.c.bf16 %v40_v3, %v39_v2  ;;  %s241_s1 = smov [#allocation7]  }
  0x29   :  { %s126_s6 = sshll.u32 %s241_s1, 4  ;;  %s127_s6 = int_to_ptr.vmem [resolvable:$true] %s126_s6 }
  0x2a   :  { %151 = vmatpush3.bf16.msk.msra.mxu0 %vm150_vm3, %v149_v4  ;;  %s205_s7 = scalar_lea.vmem %s127_s6, 128  ;;  %p210_p3 = scmp.lt.s32.totalorder %s127_s6, %s127_s6 }
  0x2b   :  { %p206_p2 = scmp.ne.s32.totalorder %s127_s6, %s205_s7  ;;  %p211_p4 = scmp.lt.s32.totalorder %s205_s7, %s205_s7 }
  0x2d   :  { %146 = vmatmul.mubr.msk.f32.vlgmr.msra.gmra.mrb[0].mxu0 %vm41_vm4, %v38_v5  ;;  %p212_p5 = por %p211_p4, %p210_p3 }
  0x2f   :  { %p213_p6 = pnand %p212_p5, %p206_p2 }
 0x100   :  { %v115_v6 = vpop.f32.mrb[0].mxu0 }
 0x101   :  { %119 = vst.msk [vmem:[#allocation7] sm:$0xff] %vm41_vm4, %v115_v6  ;;  %v147_v7 = vpop.f32.mrb[1].mxu0 }
 0x102   :  { %216 = shalt.err (!%p213_p6)
}
 0x103   :  { %s217_s10 = scalar_lea.hbm %s302_s2, 128 }
 0x104   :  { %p218_p7 = scmp.ne.s32.totalorder %s302_s2, %s217_s10  ;;  %p221_p8 = scmp.lt.u32.totalorder %s217_s10, %s302_s2 }
 0x106   :  { %p223_p9 = pnand %p221_p8, %p218_p7 }
 0x108   :  { %226 = shalt.err (!%p223_p9)
}
 0x109   :  { %129 = dma.vmem_to_hbm [thread:$0]  %s127_s6, 128, %s302_s2, [#allocation4]  }
 0x10a   :  { %231 = dma.done.wait [#allocation4], 128  }
 0x10b   :  { %232 = vsyncadd [#allocation4], 4294967168 }
 0x10c   :  { %133 = vsyncpa [#allocation3], 1 }
 0x10d   :  { %134 = vsyncpa [#allocation6], 1 }
 0x10e   :  { %135 = vsyncpa [#allocation4], 1 }

</bundles_post_ra>
